<compile_context>
chip_gen: v6e
topology: v6e:2x2x1
jax: 0.10.0
libtpu: 0.0.40
codegen_flags: <defaults>
</compile_context>

<pallas_src>
import functools
import math

import jax
import jax.numpy as jnp
from jax.experimental import pallas as pl
from jax.experimental.pallas import tpu as pltpu

LANES = 128           # lane-dense last dim -> unmasked full-width stores
MAX_TILE_ROWS = 1024  # 1024 x 128 f32 = 512 KiB per block (v7x-safe)


def _round_up(x, m):
    return (x + m - 1) // m * m


def _hash32(x):
    """lowbias32 integer hash: 32 well-mixed bits from a 32-bit counter (uint32)."""
    x = x ^ jnp.right_shift(x, 16)
    x = x * jnp.uint32(0x7FEB352D)
    x = x ^ jnp.right_shift(x, 15)
    x = x * jnp.uint32(0x846CA68B)
    x = x ^ jnp.right_shift(x, 16)
    return x


def _noiser_kernel(seed_ref, p_ref, o_ref, *, r, tile_rows):
    """o = p * (1 + r * z), z ~ N(0,1) generated in-kernel (Box-Muller pairs)."""
    half = tile_rows // 2

    # Unique per-element counter.  One counter -> one Box-Muller PAIR, feeding
    # the matching rows of the top and bottom halves of this tile.  Mixing the
    # global element offset (via program_id) keeps every tile independent.
    base = pl.program_id(0) * (tile_rows * LANES)
    row = jax.lax.broadcasted_iota(jnp.int32, (half, LANES), 0)
    col = jax.lax.broadcasted_iota(jnp.int32, (half, LANES), 1)
    ctr = (base + row * LANES + col).astype(jnp.uint32)

    seed_u = seed_ref[0].astype(jnp.uint32)
    key1 = seed_u * jnp.uint32(0x9E3779B9) + jnp.uint32(0x85EBCA6B)
    key2 = key1 ^ jnp.uint32(0xC2B2AE35)

    bits1 = _hash32(ctr ^ key1)
    bits2 = _hash32(ctr ^ key2)

    # 24-bit uniforms: u1 in (0, 1] (safe for log), u2 in [0, 1).
    inv_2_24 = jnp.float32(1.0 / 16777216.0)  # 2**-24
    u1 = (jnp.right_shift(bits1, 8).astype(jnp.int32).astype(jnp.float32)
          + jnp.float32(1.0)) * inv_2_24
    u2 = jnp.right_shift(bits2, 8).astype(jnp.int32).astype(jnp.float32) * inv_2_24

    # Box-Muller with one shared log+sqrt per pair of outputs.
    radius = jnp.sqrt(jnp.float32(-2.0) * jnp.log(u1))
    theta = jnp.float32(2.0 * math.pi) * u2
    z_top = radius * jnp.cos(theta)
    z_bot = radius * jnp.sin(theta)

    one = jnp.float32(1.0)
    rr = jnp.float32(r)
    g_top = p_ref[0:half, :].astype(jnp.float32)
    g_bot = p_ref[half:tile_rows, :].astype(jnp.float32)
    o_ref[0:half, :] = (g_top * (one + rr * z_top)).astype(o_ref.dtype)
    o_ref[half:tile_rows, :] = (g_bot * (one + rr * z_bot)).astype(o_ref.dtype)


def _noise_slab(slab, seed, r, tile_rows):
    """Run the tiled noiser kernel over a lane-dense (rows, 128) slab."""
    rows, lanes = slab.shape
    kernel = functools.partial(_noiser_kernel, r=float(r), tile_rows=tile_rows)
    fn = pl.pallas_call(
        kernel,
        out_shape=jax.ShapeDtypeStruct((rows, lanes), slab.dtype),
        grid_spec=pltpu.PrefetchScalarGridSpec(
            num_scalar_prefetch=1,                      # int32 seed -> SMEM
            grid=(rows // tile_rows,),
            in_specs=[pl.BlockSpec((tile_rows, lanes),
                                   lambda i, seed_ref: (i, 0))],
            out_specs=pl.BlockSpec((tile_rows, lanes),
                                   lambda i, seed_ref: (i, 0)),
        ),
        compiler_params=pltpu.CompilerParams(
            dimension_semantics=("parallel",)),
    )
    return fn(jnp.asarray([seed], dtype=jnp.int32), slab)


def noiser_forward(params, seed, r=0.01):
    """Return [p * (1 + r * N(0,1)) for p in params] using ONE fused kernel."""
    shapes = [p.shape for p in params]
    dtypes = [p.dtype for p in params]
    sizes = [int(math.prod(s)) for s in shapes]

    slab_dtype = jnp.result_type(*[p.dtype for p in params])
    flat = jnp.concatenate([jnp.ravel(p).astype(slab_dtype) for p in params])
    total = flat.shape[0]

    rows_needed = _round_up(total, LANES) // LANES
    tile_rows = min(MAX_TILE_ROWS, _round_up(max(rows_needed, 1), 16))
    rows = _round_up(rows_needed, tile_rows)

    slab = jnp.pad(flat, (0, rows * LANES - total)).reshape(rows, LANES)
    out_flat = _noise_slab(slab, seed, r, tile_rows).reshape(-1)[:total]

    outs, off = [], 0
    for shape, dtype, size in zip(shapes, dtypes, sizes):
        outs.append(out_flat[off:off + size].reshape(shape).astype(dtype))
        off += size
    return outs


class Noiser:
    """Functional analogue of the PyTorch Noiser module."""

    # TODO(synk): no in-place p.data mutation in JAX; forward() returns the
    # noised arrays and restore() returns the anchored originals.
    def __init__(self, params, r=0.01, anchor=True, seed=0):
        self._params = list(params)
        self._r = r
        self._anchor = anchor
        self._seed = seed
        self._backup_params = []

    def forward(self):
        if self._anchor:
            self._backup_params = list(self._params)
        self._params = noiser_forward(self._params, seed=self._seed, r=self._r)
        self._seed += 1  # fresh (but deterministic) noise on every call
        return self._params

    def restore(self):
        if self._anchor and self._backup_params:
            self._params = self._backup_params
            self._backup_params = []
        return self._params


if __name__ == "__main__":
    key = jax.random.PRNGKey(0)
    k1, k2, k3 = jax.random.split(key, 3)

    # Small synthetic "model parameters" (the module is parameter-agnostic).
    params = [
        jax.random.normal(k1, (8, 128), dtype=jnp.float32),        # weight
        jax.random.normal(k2, (128,), dtype=jnp.float32),           # bias
        jax.random.normal(k3, (2, 4, 16, 16), dtype=jnp.float32),   # conv weight
    ]
    r = 0.02

    noiser = Noiser(params, r=r, anchor=True, seed=1234)
    noised = noiser.forward()
    noised = [jax.block_until_ready(o) for o in noised]

    # --- sanity checks -----------------------------------------------------
    z_vals, z_mask = [], []
    for p, o in zip(params, noised):
        assert o.shape == p.shape and o.dtype == p.dtype
        m = jnp.abs(p) > 1e-6
        z = jnp.where(m, (o / jnp.where(m, p, 1.0) - 1.0) / r, 0.0)
        z_vals.append(jnp.ravel(z))
        z_mask.append(jnp.ravel(m).astype(jnp.float32))
    z = jnp.concatenate(z_vals)
    m = jnp.concatenate(z_mask)
    n = m.sum()
    mean = (z * m).sum() / n
    std = jnp.sqrt((((z - mean) * m) ** 2).sum() / n)
    assert float(jnp.max(jnp.abs(z * m))) < 10.0, "noise magnitude out of range"
    assert abs(float(mean)) < 0.2, f"noise mean {float(mean)} too far from 0"
    assert 0.7 < float(std) < 1.3, f"noise std {float(std)} too far from 1"

    # restore() must give back the anchored originals exactly.
    restored = noiser.restore()
    for p, q in zip(params, restored):
        assert bool(jnp.all(p == q))

    print("KERNEL_OK")
</pallas_src>

<mosaic_0001>
module attributes {stable_mosaic.version = 11 : i64} {
  func.func @_noiser_kernel(%arg0: i32, %arg1: memref<1xi32, #tpu.memory_space<smem>>, %arg2: memref<32x128xf32, #tpu.memory_space<vmem>>, %arg3: memref<32x128xf32, #tpu.memory_space<vmem>>) attributes {dimension_semantics = [#tpu.dimension_semantics<parallel>], iteration_bounds = array<i64: 1>, scalar_prefetch = 1 : i64, scratch_operands = 0 : i64, tpu.core_type = #tpu.core_type<tc>, window_params = [{transform_indices = @transform_0, window_bounds = array<i64: 32, 128>}, {transform_indices = @transform_1, window_bounds = array<i64: 32, 128>}]} {
    %c4096_i32 = arith.constant 4096 : i32
    %0 = arith.muli %arg0, %c4096_i32 : i32
    %1 = tpu.iota {dimensions = array<i32: 0>} : vector<16x128xi32>
    %2 = tpu.iota {dimensions = array<i32: 1>} : vector<16x128xi32>
    %c128_i32 = arith.constant 128 : i32
    %3 = vector.broadcast %c128_i32 : i32 to vector<16x128xi32>
    %4 = arith.muli %1, %3 : vector<16x128xi32>
    %5 = vector.broadcast %0 : i32 to vector<16x128xi32>
    %6 = arith.addi %5, %4 : vector<16x128xi32>
    %7 = arith.addi %6, %2 : vector<16x128xi32>
    %c0 = arith.constant 0 : index
    %8 = memref.load %arg1[%c0] : memref<1xi32, #tpu.memory_space<smem>>
    %c-1640531527_i32 = arith.constant -1640531527 : i32
    %9 = arith.muli %8, %c-1640531527_i32 : i32
    %c-2048144789_i32 = arith.constant -2048144789 : i32
    %10 = arith.addi %9, %c-2048144789_i32 : i32
    %c-1028477387_i32 = arith.constant -1028477387 : i32
    %11 = arith.xori %10, %c-1028477387_i32 : i32
    %12 = vector.broadcast %10 : i32 to vector<16x128xi32>
    %13 = arith.xori %7, %12 : vector<16x128xi32>
    %c16_i32 = arith.constant 16 : i32
    %14 = vector.broadcast %c16_i32 : i32 to vector<16x128xi32>
    %15 = arith.shrui %13, %14 : vector<16x128xi32>
    %16 = arith.xori %13, %15 : vector<16x128xi32>
    %c2146121005_i32 = arith.constant 2146121005 : i32
    %17 = vector.broadcast %c2146121005_i32 : i32 to vector<16x128xi32>
    %18 = arith.muli %16, %17 : vector<16x128xi32>
    %c15_i32 = arith.constant 15 : i32
    %19 = vector.broadcast %c15_i32 : i32 to vector<16x128xi32>
    %20 = arith.shrui %18, %19 : vector<16x128xi32>
    %21 = arith.xori %18, %20 : vector<16x128xi32>
    %c-2073254261_i32 = arith.constant -2073254261 : i32
    %22 = vector.broadcast %c-2073254261_i32 : i32 to vector<16x128xi32>
    %23 = arith.muli %21, %22 : vector<16x128xi32>
    %c16_i32_0 = arith.constant 16 : i32
    %24 = vector.broadcast %c16_i32_0 : i32 to vector<16x128xi32>
    %25 = arith.shrui %23, %24 : vector<16x128xi32>
    %26 = arith.xori %23, %25 : vector<16x128xi32>
    %27 = vector.broadcast %11 : i32 to vector<16x128xi32>
    %28 = arith.xori %7, %27 : vector<16x128xi32>
    %c16_i32_1 = arith.constant 16 : i32
    %29 = vector.broadcast %c16_i32_1 : i32 to vector<16x128xi32>
    %30 = arith.shrui %28, %29 : vector<16x128xi32>
    %31 = arith.xori %28, %30 : vector<16x128xi32>
    %c2146121005_i32_2 = arith.constant 2146121005 : i32
    %32 = vector.broadcast %c2146121005_i32_2 : i32 to vector<16x128xi32>
    %33 = arith.muli %31, %32 : vector<16x128xi32>
    %c15_i32_3 = arith.constant 15 : i32
    %34 = vector.broadcast %c15_i32_3 : i32 to vector<16x128xi32>
    %35 = arith.shrui %33, %34 : vector<16x128xi32>
    %36 = arith.xori %33, %35 : vector<16x128xi32>
    %c-2073254261_i32_4 = arith.constant -2073254261 : i32
    %37 = vector.broadcast %c-2073254261_i32_4 : i32 to vector<16x128xi32>
    %38 = arith.muli %36, %37 : vector<16x128xi32>
    %c16_i32_5 = arith.constant 16 : i32
    %39 = vector.broadcast %c16_i32_5 : i32 to vector<16x128xi32>
    %40 = arith.shrui %38, %39 : vector<16x128xi32>
    %41 = arith.xori %38, %40 : vector<16x128xi32>
    %c8_i32 = arith.constant 8 : i32
    %42 = vector.broadcast %c8_i32 : i32 to vector<16x128xi32>
    %43 = arith.shrui %26, %42 : vector<16x128xi32>
    %44 = arith.sitofp %43 : vector<16x128xi32> to vector<16x128xf32>
    %cst = arith.constant 1.000000e+00 : f32
    %45 = vector.broadcast %cst : f32 to vector<16x128xf32>
    %46 = arith.addf %44, %45 : vector<16x128xf32>
    %cst_6 = arith.constant 5.96046448E-8 : f32
    %47 = vector.broadcast %cst_6 : f32 to vector<16x128xf32>
    %48 = arith.mulf %46, %47 : vector<16x128xf32>
    %c8_i32_7 = arith.constant 8 : i32
    %49 = vector.broadcast %c8_i32_7 : i32 to vector<16x128xi32>
    %50 = arith.shrui %41, %49 : vector<16x128xi32>
    %51 = arith.sitofp %50 : vector<16x128xi32> to vector<16x128xf32>
    %cst_8 = arith.constant 5.96046448E-8 : f32
    %52 = vector.broadcast %cst_8 : f32 to vector<16x128xf32>
    %53 = arith.mulf %51, %52 : vector<16x128xf32>
    %54 = math.log %48 : vector<16x128xf32>
    %cst_9 = arith.constant -2.000000e+00 : f32
    %55 = vector.broadcast %cst_9 : f32 to vector<16x128xf32>
    %56 = arith.mulf %55, %54 : vector<16x128xf32>
    %57 = math.sqrt %56 : vector<16x128xf32>
    %cst_10 = arith.constant 6.28318548 : f32
    %58 = vector.broadcast %cst_10 : f32 to vector<16x128xf32>
    %59 = arith.mulf %58, %53 : vector<16x128xf32>
    %60 = math.cos %59 : vector<16x128xf32>
    %61 = arith.mulf %57, %60 : vector<16x128xf32>
    %62 = math.sin %59 : vector<16x128xf32>
    %63 = arith.mulf %57, %62 : vector<16x128xf32>
    %c0_11 = arith.constant 0 : index
    %c0_12 = arith.constant 0 : index
    %64 = vector.load %arg2[%c0_11, %c0_12] : memref<32x128xf32, #tpu.memory_space<vmem>>, vector<16x128xf32>
    %c16 = arith.constant 16 : index
    %c0_13 = arith.constant 0 : index
    %65 = vector.load %arg2[%c16, %c0_13] : memref<32x128xf32, #tpu.memory_space<vmem>>, vector<16x128xf32>
    %cst_14 = arith.constant 2.000000e-02 : f32
    %66 = vector.broadcast %cst_14 : f32 to vector<16x128xf32>
    %67 = arith.mulf %66, %61 : vector<16x128xf32>
    %cst_15 = arith.constant 1.000000e+00 : f32
    %68 = vector.broadcast %cst_15 : f32 to vector<16x128xf32>
    %69 = arith.addf %68, %67 : vector<16x128xf32>
    %70 = arith.mulf %64, %69 : vector<16x128xf32>
    %c0_16 = arith.constant 0 : index
    %c0_17 = arith.constant 0 : index
    %71 = vector.load %arg3[%c0_16, %c0_17] : memref<32x128xf32, #tpu.memory_space<vmem>>, vector<16x128xf32>
    tpu.vector_store %arg3[%c0_16, %c0_17], %70 {strides = array<i32>} : memref<32x128xf32, #tpu.memory_space<vmem>>, vector<16x128xf32>,
    %cst_18 = arith.constant 2.000000e-02 : f32
    %72 = vector.broadcast %cst_18 : f32 to vector<16x128xf32>
    %73 = arith.mulf %72, %63 : vector<16x128xf32>
    %cst_19 = arith.constant 1.000000e+00 : f32
    %74 = vector.broadcast %cst_19 : f32 to vector<16x128xf32>
    %75 = arith.addf %74, %73 : vector<16x128xf32>
    %76 = arith.mulf %65, %75 : vector<16x128xf32>
    %c16_20 = arith.constant 16 : index
    %c0_21 = arith.constant 0 : index
    %77 = vector.load %arg3[%c16_20, %c0_21] : memref<32x128xf32, #tpu.memory_space<vmem>>, vector<16x128xf32>
    tpu.vector_store %arg3[%c16_20, %c0_21], %76 {strides = array<i32>} : memref<32x128xf32, #tpu.memory_space<vmem>>, vector<16x128xf32>,
    return
  }
  func.func @transform_0(%arg0: i32, %arg1: memref<1xi32, #tpu.memory_space<smem>>) -> (i32, i32) {
    %c0_i32 = arith.constant 0 : i32
    %c0_i32_0 = arith.constant 0 : i32
    return %arg0, %c0_i32 : i32, i32
  }
  func.func @transform_1(%arg0: i32, %arg1: memref<1xi32, #tpu.memory_space<smem>>) -> (i32, i32) {
    %c0_i32 = arith.constant 0 : i32
    %c0_i32_0 = arith.constant 0 : i32
    return %arg0, %c0_i32 : i32, i32
  }
}

</mosaic_0001>

<bundles_post_ra>
// kernel: tpu_custom_call.1
= control target key start
LH: loop header
LB: loop body
LE: loop exit
PB: predicated region body
PF: predicated region fallthrough
CT: control target
= control target key end

     0   :  { %8 = vsyncpa [#allocation5], 0  ;;  %s818_s0 = inlined_call_operand.<no memory space> [shape: s32[1], index: 0, kind: input, shape index: {}]   ;;  %s819_s1 = inlined_call_operand.hbm [shape: f32[32,128], index: 1, kind: input, shape index: {}]   ;;  %s820_s2 = inlined_call_operand.hbm [shape: f32[32,128], index: 2, kind: output, shape index: {}]  }
   0x1   :  { %9 = vsyncpa [#allocation6], 0  ;;  %s665_s9 = smov [#allocation4]  }
   0x2   :  { %s15_s10 = sshll.u32 %s665_s9, 4  ;;  %s16_s10 = int_to_ptr.vmem [resolvable:$true] %s15_s10 }
   0x3   :  { %s629_s11 = scalar_lea.vmem %s16_s10, 512  ;;  %p634_p1 = scmp.lt.s32.totalorder %s16_s10, %s16_s10 }
   0x4   :  { %p630_p0 = scmp.ne.s32.totalorder %s16_s10, %s629_s11  ;;  %p635_p2 = scmp.lt.s32.totalorder %s629_s11, %s629_s11 }
   0x6   :  { %p636_p3 = por %p635_p2, %p634_p1 }
   0x8   :  { %p637_p4 = pnand %p636_p3, %p630_p0 }
   0xa   :  { %640 = shalt.err (!%p637_p4)
}
   0xb   :  { %s666_s12 = smov 128   ;;  %s667_s13 = smov 8  }
   0xc   :  { %21 = dma.hbm_to_vmem [thread:$0]  %s819_s1, 512, %s16_s10, [#allocation5], %s666_s12, %s666_s12, %s667_s13  }
   0xd   :  { %661 = dma.done.wait [#allocation5], 512  }
   0xe   :  { %662 = vsyncadd [#allocation5], 4294966784  ;;  %v26_v0 = vlaneseq  ;;  %s39_s18 = smul.u32 2654435769, %s818_s0  ;;  %s674_s0 = smov [#allocation7]  }
   0xf   :  { %s559_s1 = sshll.u32 %s674_s0, 4  ;;  %s560_s1 = int_to_ptr.vmem [resolvable:$true] %s559_s1 }
  0x10   :  { %v27_v1 = vshrl.u32 %v26_v0, 7  ;;  %v30_v2 = vand.u32 127, %v26_v0  ;;  %s699_s19 = sadd.s32 2246822507, %s39_s18  ;;  %s641_s21 = scalar_lea.vmem %s560_s1, 512 }
  0x11   :  { %s41_s20 = sxor.u32 3266489909, %s699_s19  ;;  %v42_v5 = vstv %s699_s19  ;;  %p642_p5 = scmp.ne.s32.totalorder %s560_s1, %s641_s21 }
  0x12   :  { %v31_v3 = vmul.u32 128, %v27_v1  ;;  %v28_v4 = vadd.s32 8, %v27_v1  ;;  %v61_v6 = vstv %s41_s20  ;;  %v668_v1 = vmov 683565275   ;;  %p646_p6 = scmp.lt.s32.totalorder %s560_s1, %s560_s1  ;;  %p647_p7 = scmp.lt.s32.totalorder %s641_s21, %s641_s21 }
  0x14   :  { %v36_v7 = vadd.s32 %v31_v3, %v30_v2  ;;  %v32_v8 = vmul.u32 128, %v28_v4  ;;  %v669_v3 = vmov 2475754826   ;;  %p648_p8 = por %p647_p7, %p646_p6 }
  0x16   :  { %v43_v9 = vxor.u32 %v42_v5, %v36_v7  ;;  %v62_v10 = vxor.u32 %v61_v6, %v36_v7  ;;  %v37_v11 = vadd.s32 %v32_v8, %v30_v2  ;;  %v671_v8 = vmov 2102212464   ;;  %p649_p9 = pnand %p648_p8, %p642_p5 }
  0x18   :  { %v64_v12 = vshrl.u32 %v62_v10, 16  ;;  %v63_v13 = vxor.u32 %v61_v6, %v37_v11  ;;  %v45_v14 = vshrl.u32 %v43_v9, 16  ;;  %v44_v32 = vxor.u32 %v42_v5, %v37_v11 }
  0x19   :  { %v670_v6 = vmov 2131351028  }
  0x1a   :  { %v66_v15 = vxor.u32 %v64_v12, %v62_v10  ;;  %v65_v16 = vshrl.u32 %v63_v13, 16  ;;  %v47_v19 = vxor.u32 %v45_v14, %v43_v9  ;;  %v46_v38 = vshrl.u32 %v44_v32, 16 }
  0x1b   :  { %v672_v10 = vmov 920167782  }
  0x1c   :  { %v68_v17 = vmul.u32 2146121005, %v66_v15  ;;  %v67_v18 = vxor.u32 %v65_v16, %v63_v13  ;;  %v49_v24 = vmul.u32 2146121005, %v47_v19  ;;  %v48_v44 = vxor.u32 %v46_v38, %v44_v32 }
  0x1d   :  { %v673_v19 = vmov 1326507024  }
  0x1e   :  { %v70_v20 = vshrl.u32 %v68_v17, 15  ;;  %v69_v21 = vmul.u32 2146121005, %v67_v18  ;;  %v51_v29 = vshrl.u32 %v49_v24, 15  ;;  %v50_v49 = vmul.u32 2146121005, %v48_v44 }
  0x20   :  { %v72_v22 = vxor.u32 %v70_v20, %v68_v17  ;;  %v71_v23 = vshrl.u32 %v69_v21, 15  ;;  %v53_v35 = vxor.u32 %v51_v29, %v49_v24  ;;  %v52_v56 = vshrl.u32 %v50_v49, 15 }
  0x22   :  { %v74_v25 = vmul.u32 2221713035, %v72_v22  ;;  %v73_v26 = vxor.u32 %v71_v23, %v69_v21  ;;  %v55_v41 = vmul.u32 2221713035, %v53_v35  ;;  %v712_v62 = vxor.u32 %v52_v56, %v50_v49 }
  0x24   :  { %v76_v27 = vshrl.u32 %v74_v25, 16  ;;  %v75_v28 = vmul.u32 2221713035, %v73_v26  ;;  %v57_v46 = vshrl.u32 %v55_v41, 16 }
  0x26   :  { %v78_v30 = vxor.u32 %v76_v27, %v74_v25  ;;  %v77_v31 = vshrl.u32 %v75_v28, 16  ;;  %v59_v52 = vxor.u32 %v57_v46, %v55_v41  ;;  %v56_v27 = vmul.u32 2221713035, %v712_v62 }
  0x28   :  { %v88_v33 = vshrl.u32 %v78_v30, 8  ;;  %v79_v34 = vxor.u32 %v77_v31, %v75_v28  ;;  %v80_v57 = vshrl.u32 %v59_v52, 8 }
  0x2a   :  { %v90_v36 = vcvt.s32.f32 %v88_v33  ;;  %v89_v37 = vshrl.u32 %v79_v34, 8  ;;  %v82_v5 = vcvt.s32.f32 %v80_v57 }
  0x2c   :  { %v92_v39 = vmul.f32 5.9604645e-08, %v90_v36  ;;  %v91_v40 = vcvt.s32.f32 %v89_v37  ;;  %v84_v36 = vadd.f32 1.0, %v82_v5 }
  0x2e   :  { %v703_v42 = vmul.f32 6.2831855, %v92_v39  ;;  %v93_v43 = vmul.f32 5.9604645e-08, %v91_v40 }
  0x30   :  { %v119_v45 = vand.u32 2139095040, %v703_v42  ;;  %v706_v47 = vmul.f32 6.2831855, %v93_v43  ;;  %v116_v53 = vand.u32 2147483647, %v703_v42  ;;  %vm118_vm13 = vcmp.lt.s32.totalorder %v703_v42, 0 }
  0x32   :  { %v120_v48 = vshrl.u32 %v119_v45, 23  ;;  %v222_v50 = vand.u32 2139095040, %v706_v47  ;;  %v123_v59 = vand.u32 8388607, %v116_v53  ;;  %v219_v46 = vand.u32 2147483647, %v706_v47 }
  0x33   :  { %vm117_vm14 = vcmp.le.f32.partialorder %v116_v53, 0.7853982 }
  0x34   :  { %v571_v51 = vadd.s32 4294967169, %v120_v48  ;;  %v223_v55 = vshrl.u32 %v222_v50, 23  ;;  %v124_v12 = vor.u32 8388608, %v123_v59 }
  0x36   :  { %v126_v54 = vadd.s32 1, %v571_v51  ;;  %v575_v61 = vadd.s32 4294967169, %v223_v55  ;;  %v164_v26 = vshll.u32 %v124_v12, 8  ;;  %v86_v51 = vmul.f32 5.9604645e-08, %v84_v36 }
  0x37   :  { %v226_v55 = vand.u32 8388607, %v219_v46 }
  0x38   :  { %vm127_vm0 = vcmp.gt.s32.totalorder %v126_v54, 0  ;;  %v229_v15 = vadd.s32 1, %v575_v61  ;;  %605 = vlog2.f32 %v86_v51 }
  0x39   :  { %v128_v58 = vsel %vm127_vm0, %v126_v54, 0  ;;  %v58_v54 = vshrl.u32 %v56_v27, 16  ;;  %v227_v12 = vor.u32 8388608, %v226_v55 }
  0x3a   :  { %v130_v60 = vand.u32 31, %v128_v58  ;;  %v129_v63 = vshrl.u32 %v128_v58, 5  ;;  %vm230_vm5 = vcmp.gt.s32.totalorder %v229_v15, 0 }
  0x3b   :  { %v231_v48 = vsel %vm230_vm5, %v229_v15, 0 }
  0x3c   :  { %v131_v0 = vsub.s32 32, %v130_v60  ;;  %v133_v2 = vshll.u32 %v668_v1, %v130_v60  ;;  %v136_v4 = vshll.u32 %v669_v3, %v130_v60  ;;  %v139_v7 = vshll.u32 %v670_v6, %v130_v60 }
  0x3d   :  { %v142_v9 = vshll.u32 %v671_v8, %v130_v60  ;;  %v145_v11 = vshll.u32 %v672_v10, %v130_v60  ;;  %vm148_vm1 = vcmp.lt.s32.totalorder %v129_v63, 1  ;;  %vm151_vm2 = vcmp.lt.s32.totalorder %v129_v63, 4 }
  0x3e   :  { %v134_v13 = vshrl.u32 %v669_v3, %v131_v0  ;;  %v137_v14 = vshrl.u32 %v670_v6, %v131_v0  ;;  %v132_v16 = vshrl.u32 %v668_v1, %v131_v0  ;;  %v140_v17 = vshrl.u32 %v671_v8, %v131_v0 }
  0x3f   :  { %v143_v18 = vshrl.u32 %v672_v10, %v131_v0  ;;  %v146_v20 = vshrl.u32 %v673_v19, %v131_v0  ;;  %vm150_vm3 = vcmp.lt.s32.totalorder %v129_v63, 3  ;;  %vm149_vm4 = vcmp.lt.s32.totalorder %v129_v63, 2 }
  0x40   :  { %v135_v21 = vor.u32 %v134_v13, %v133_v2  ;;  %v138_v22 = vor.u32 %v137_v14, %v136_v4  ;;  %v141_v23 = vor.u32 %v140_v17, %v139_v7  ;;  %v233_v50 = vand.u32 31, %v231_v48 }
  0x41   :  { %v144_v24 = vor.u32 %v143_v18, %v142_v9  ;;  %v147_v25 = vor.u32 %v146_v20, %v145_v11  ;;  %v232_v63 = vshrl.u32 %v231_v48, 5  ;;  %v60_v20 = vxor.u32 %v58_v54, %v56_v27 }
  0x42   :  { %v152_v28 = vsel %vm148_vm1, %v132_v16, %v135_v21  ;;  %v153_v29 = vsel %vm151_vm2, %v141_v23, 2102212464  ;;  %v156_v30 = vsel %vm148_vm1, %v135_v21, %v138_v22  ;;  %v160_v34 = vsel %vm148_vm1, %v138_v22, %v141_v23 }
  0x43   :  { %v157_v31 = vsel %vm151_vm2, %v144_v24, 920167782  ;;  %v154_v32 = vsel %vm150_vm3, %v138_v22, %v153_v29  ;;  %v161_v35 = vsel %vm151_vm2, %v147_v25, 1326507024  ;;  %v234_v56 = vsub.s32 32, %v233_v50 }
  0x44   :  { %v158_v33 = vsel %vm150_vm3, %v141_v23, %v157_v31  ;;  %v162_v38 = vsel %vm150_vm3, %v144_v24, %v161_v35  ;;  %v155_v39 = vsel %vm149_vm4, %v152_v28, %v154_v32  ;;  %v236_v57 = vshll.u32 %v668_v1, %v233_v50 }
  0x45   :  { %v159_v37 = vsel %vm149_vm4, %v156_v30, %v158_v33  ;;  %v163_v40 = vsel %vm149_vm4, %v160_v34, %v162_v38  ;;  %v171_v49 = vmul.u32 %v164_v26, %v155_v39  ;;  %v239_v59 = vshll.u32 %v669_v3, %v233_v50 }
  0x46   :  { %v722_v41 = vmul.u32.u64.low %v164_v26, %v159_v37  ;;  %v723_v43 = vmul.u32.u64.high %v164_v26, %v159_v37, %v722_v41  ;;  %v726_v44 = vmul.u32.u64.low %v164_v26, %v163_v40  ;;  %v727_v45 = vmul.u32.u64.high %v164_v26, %v163_v40, %v726_v44 }
  0x47   :  { %v242_v60 = vshll.u32 %v670_v6, %v233_v50  ;;  %v245_v61 = vshll.u32 %v671_v8, %v233_v50  ;;  %v237_v0 = vshrl.u32 %v669_v3, %v234_v56  ;;  %v240_v2 = vshrl.u32 %v670_v6, %v234_v56 }
  0x48   :  { %v174_v52 = vadd.s32 1, %v723_v43  ;;  %vm173_vm6 = vc.u32 %v727_v45, %v722_v41  ;;  %v243_v4 = vshrl.u32 %v671_v8, %v234_v56  ;;  %v246_v5 = vshrl.u32 %v672_v10, %v234_v56 }
  0x49   :  { %v248_v7 = vshll.u32 %v672_v10, %v233_v50  ;;  %v249_v9 = vshrl.u32 %v673_v19, %v234_v56  ;;  %v238_v13 = vor.u32 %v237_v0, %v236_v57  ;;  %v241_v14 = vor.u32 %v240_v2, %v239_v59 }
  0x4a   :  { %v175_v58 = vsel %vm173_vm6, %v174_v52, %v723_v43  ;;  %v244_v15 = vor.u32 %v243_v4, %v242_v60  ;;  %v247_v16 = vor.u32 %v246_v5, %v245_v61  ;;  %vm251_vm7 = vcmp.lt.s32.totalorder %v232_v63, 1 }
  0x4b   :  { %v176_v62 = vadd.s32 %v175_v58, %v171_v49  ;;  %v250_v17 = vor.u32 %v249_v9, %v248_v7  ;;  %vm254_vm8 = vcmp.lt.s32.totalorder %v232_v63, 4  ;;  %v235_v3 = vshrl.u32 %v668_v1, %v234_v56  ;;  %v606_v49 = vpop.eup %605 }
  0x4c   :  { %vm253_vm9 = vcmp.lt.s32.totalorder %v232_v63, 3  ;;  %vm252_vm10 = vcmp.lt.s32.totalorder %v232_v63, 2  ;;  %v256_v8 = vsel %vm254_vm8, %v244_v15, 2102212464  ;;  %v267_v10 = vshll.u32 %v227_v12, 8 }
  0x4d   :  { %v177_v11 = vadd.s32 536870912, %v176_v62  ;;  %v259_v19 = vsel %vm251_vm7, %v238_v13, %v241_v14  ;;  %v260_v21 = vsel %vm254_vm8, %v247_v16, 920167782  ;;  %v263_v22 = vsel %vm251_vm7, %v241_v14, %v244_v15 }
  0x4e   :  { %v264_v23 = vsel %vm254_vm8, %v250_v17, 1326507024  ;;  %v261_v25 = vsel %vm253_vm9, %v244_v15, %v260_v21  ;;  %v81_v26 = vshrl.u32 %v60_v20, 8  ;;  %v255_v28 = vsel %vm251_vm7, %v235_v3, %v238_v13 }
  0x4f   :  { %v739_v18 = vshrl.u32 %v177_v11, 30  ;;  %v265_v27 = vsel %vm253_vm9, %v247_v16, %v264_v23  ;;  %v257_v1 = vsel %vm253_vm9, %v241_v14, %v256_v8  ;;  %v262_v30 = vsel %vm252_vm10, %v259_v19, %v261_v25 }
  0x50   :  { %v266_v31 = vsel %vm252_vm10, %v263_v22, %v265_v27  ;;  %v83_v35 = vcvt.s32.f32 %v81_v26  ;;  %v258_v36 = vsel %vm252_vm10, %v255_v28, %v257_v1  ;;  %v172_v50 = vadd.s32 %v722_v41, %v727_v45 }
  0x51   :  { %v179_v6 = vshll.u32 %v739_v18, 30  ;;  %v748_v32 = vmul.u32.u64.low %v267_v10, %v266_v31  ;;  %v749_v33 = vmul.u32.u64.high %v267_v10, %v266_v31, %v748_v32  ;;  %v274_v43 = vmul.u32 %v267_v10, %v258_v36 }
  0x52   :  { %v752_v37 = vmul.u32.u64.low %v267_v10, %v262_v30  ;;  %v753_v38 = vmul.u32.u64.high %v267_v10, %v262_v30, %v752_v37  ;;  %v85_v44 = vadd.f32 1.0, %v83_v35  ;;  %v95_v58 = vmul.f32 0.6931472, %v606_v49 }
  0x53   :  { %v180_v24 = vsub.s32 %v176_v62, %v179_v6  ;;  %v202_v13 = vsub.s32 4, %v739_v18  ;;  %vm208_vm1 = vweird.f32 %v703_v42  ;;  %vm221_vm3 = vcmp.lt.s32.totalorder %v706_v47, 0 }
  0x54   :  { %vm276_vm11 = vc.u32 %v749_v33, %v752_v37  ;;  %v277_v48 = vadd.s32 1, %v753_v38  ;;  %v87_v59 = vmul.f32 5.9604645e-08, %v85_v44  ;;  %v762_v4 = vmul.f32 -2.0, %v95_v58 }
  0x55   :  { %v182_v29 = vsub.s32 0, %v180_v24  ;;  %v203_v20 = vsel %vm118_vm13, %v202_v13, %v739_v18  ;;  %v275_v19 = vadd.s32 %v752_v37, %v749_v33  ;;  %vm786_vm10 = vcmp.le.f32.partialorder %v219_v46, 0.7853982 }
  0x56   :  { %v278_v52 = vsel %vm276_vm11, %v277_v48, %v753_v38  ;;  %607 = vlog2.f32 %v87_v59  ;;  %v205_v10 = vsel %vm117_vm14, 0, %v203_v20  ;;  %vm102_vm0 = vcmp.eq.f32.partialorder %v762_v4, inf }
  0x57   :  { %v572_v34 = vmin.u32 %v182_v29, %v180_v24  ;;  %v279_v57 = vadd.s32 %v278_v52, %v274_v43  ;;  %609 = vrsqrt.f32 %v762_v4  ;;  %v417_v25 = vadd.s32 3, %v205_v10 }
  0x58   :  { %v209_v30 = vand.u32 3, %v205_v10  ;;  %vm104_vm2 = vcmp.eq.f32.partialorder %v762_v4, 0.0  ;;  %v105_v35 = vand.u32 2147483648, %v762_v4 }
  0x59   :  { %v184_v39 = vclz %v572_v34  ;;  %v280_v62 = vadd.s32 536870912, %v279_v57  ;;  %v418_v32 = vand.u32 3, %v417_v25 }
  0x5a   :  { %vm214_vm4 = vcmp.eq.s32.totalorder %v209_v30, 2  ;;  %vm211_vm6 = vcmp.eq.s32.totalorder %v209_v30, 0  ;;  %vm210_vm8 = vcmp.lt.s32.totalorder %v209_v30, 2  ;;  %v535_v30 = vld [vmem:[#allocation4 + $0x8] sm:$0xff] }
  0x5b   :  { %v573_v40 = vadd.s32 4294967294, %v184_v39  ;;  %v760_v2 = vshrl.u32 %v280_v62, 30  ;;  %vm423_vm5 = vcmp.eq.s32.totalorder %v418_v32, 2  ;;  %vm420_vm7 = vcmp.eq.s32.totalorder %v418_v32, 0 }
  0x5c   :  { %vm419_vm9 = vcmp.lt.s32.totalorder %v418_v32, 2 }
  0x5d   :  { %vm574_vm12 = vcmp.lt.s32.totalorder %v573_v40, 0  ;;  %v282_v5 = vshll.u32 %v760_v2, 30  ;;  %v305_v48 = vsub.s32 4, %v760_v2 }
  0x5e   :  { %v187_v51 = vsel %vm574_vm12, 0, %v573_v40 }
  0x5f   :  { %v188_v54 = vsub.s32 32, %v187_v51  ;;  %v189_v55 = vshll.u32 %v180_v24, %v187_v51  ;;  %v192_v56 = vsub.s32 4294967266, %v187_v51  ;;  %v283_v9 = vsub.s32 %v279_v57, %v282_v5  ;;  %v534_v5 = vld [vmem:[#allocation4] sm:$0xff] }
  0x60   :  { %v306_v46 = vsel %vm221_vm3, %v305_v48, %v760_v2 }
  0x61   :  { %v190_v60 = vshrl.u32 %v172_v50, %v188_v54  ;;  %v193_v61 = vadd.s32 127, %v192_v56  ;;  %v285_v12 = vsub.s32 0, %v283_v9 }
  0x63   :  { %v191_v63 = vor.u32 %v190_v60, %v189_v55  ;;  %v194_v0 = vshll.u32 %v193_v61, 23  ;;  %v576_v15 = vmin.u32 %v285_v12, %v283_v9  ;;  %v608_v8 = vpop.eup %607 }
  0x64   :  { %v97_v24 = vmul.f32 0.6931472, %v608_v8  ;;  %v610_v26 = vpop.eup %609 }
  0x65   :  { %v195_v41 = vor.u32 4788187, %v194_v0  ;;  %v198_v45 = vcvt.s32.f32 %v191_v63  ;;  %v287_v17 = vclz %v576_v15  ;;  %v101_v1 = vmul.f32 %v610_v26, %v762_v4 }
  0x66   :  { %v774_v31 = vmul.f32 -2.0, %v97_v24 }
  0x67   :  { %v196_v7 = vand.u32 2147483647, %v195_v41  ;;  %v577_v6 = vadd.s32 4294967294, %v287_v17  ;;  %v103_v38 = vsel %vm102_vm0, %v762_v4, %v101_v1  ;;  %v308_v41 = vsel %vm786_vm10, 0, %v306_v46 }
  0x68   :  { %v106_v54 = vsel %vm104_vm2, %v105_v35, %v103_v38  ;;  %vm109_vm11 = vcmp.eq.f32.partialorder %v774_v31, inf  ;;  %vm111_vm12 = vcmp.eq.f32.partialorder %v774_v31, 0.0  ;;  %v112_v20 = vand.u32 2147483648, %v774_v31 }
  0x69   :  { %v199_v11 = vmul.f32 %v198_v45, %v196_v7  ;;  %vm578_vm15 = vcmp.lt.s32.totalorder %v577_v6, 0  ;;  %v536_v7 = vld [vmem:[#allocation4 + $0x10] sm:$0xff] }
  0x6a   :  { %v290_v21 = vsel %vm578_vm15, 0, %v577_v6 }
  0x6b   :  { %v200_v14 = vxor.u32 2147483648, %v199_v11  ;;  %v291_v22 = vsub.s32 32, %v290_v21  ;;  %v292_v23 = vshll.u32 %v283_v9, %v290_v21  ;;  %v295_v53 = vsub.s32 4294967266, %v290_v21 }
  0x6d   :  { %v201_v16 = vsel %vm118_vm13, %v200_v14, %v199_v11  ;;  %v293_v28 = vshrl.u32 %v275_v19, %v291_v22  ;;  %v296_v27 = vadd.s32 127, %v295_v53  ;;  %v521_v11 = vadd.s32 3, %v308_v41 }
  0x6e   :  { %v204_v3 = vsel %vm117_vm14, %v703_v42, %v201_v16  ;;  %v312_v42 = vand.u32 3, %v308_v41 }
  0x6f   :  { %611 = vcosq.f32 %v204_v3  ;;  %v294_v18 = vor.u32 %v293_v28, %v292_v23  ;;  %v297_v29 = vshll.u32 %v296_v27, 23  ;;  %v522_v15 = vand.u32 3, %v521_v11 }
  0x70   :  { %613 = vsinq.f32 %v204_v3  ;;  %vm317_vm13 = vcmp.eq.s32.totalorder %v312_v42, 2  ;;  %vm314_vm15 = vcmp.eq.s32.totalorder %v312_v42, 0 }
  0x71   :  { %v298_v33 = vor.u32 4788187, %v297_v29  ;;  %v301_v34 = vcvt.s32.f32 %v294_v18  ;;  %615 = vrsqrt.f32 %v774_v31  ;;  %vm527_vm14 = vcmp.eq.s32.totalorder %v522_v15, 2 }
  0x72   :  { %vm524_vm0 = vcmp.eq.s32.totalorder %v522_v15, 0  ;;  %vm523_vm2 = vcmp.lt.s32.totalorder %v522_v15, 2 }
  0x73   :  { %v299_v36 = vand.u32 2147483647, %v298_v33 }
  0x75   :  { %v302_v43 = vmul.f32 %v301_v34, %v299_v36 }
  0x77   :  { %v303_v51 = vxor.u32 2147483648, %v302_v43 }
  0x79   :  { %v304_v58 = vsel %vm221_vm3, %v303_v51, %v302_v43  ;;  %vm311_vm3 = vweird.f32 %v706_v47 }
  0x7a   :  { %v307_v61 = vsel %vm786_vm10, %v706_v47, %v304_v58 }
  0x7b   :  { %617 = vcosq.f32 %v307_v61 }
  0x7c   :  { %v612_v37 = vpop.eup %611  ;;  %619 = vsinq.f32 %v307_v61 }
  0x7d   :  { %v614_v39 = vpop.eup %613  ;;  %v215_v40 = vxor.u32 2147483648, %v612_v37 }
  0x7e   :  { %v212_v44 = vxor.u32 2147483648, %v614_v39  ;;  %v616_v12 = vpop.eup %615 }
  0x7f   :  { %v216_v49 = vsel %vm214_vm4, %v215_v40, %v614_v39  ;;  %v425_v52 = vsel %vm423_vm5, %v215_v40, %v614_v39  ;;  %v108_v16 = vmul.f32 %v616_v12, %v774_v31 }
  0x80   :  { %v213_v55 = vsel %vm211_vm6, %v612_v37, %v212_v44  ;;  %v422_v56 = vsel %vm420_vm7, %v612_v37, %v212_v44 }
  0x81   :  { %v217_v57 = vsel %vm210_vm8, %v213_v55, %v216_v49  ;;  %v426_v59 = vsel %vm419_vm9, %v422_v56, %v425_v52  ;;  %v110_v6 = vsel %vm109_vm11, %v774_v31, %v108_v16  ;;  %v537_v31 = vld [vmem:[#allocation4 + $0x18] sm:$0xff] }
  0x82   :  { %v218_v60 = vsel %vm208_vm1, nan, %v217_v57  ;;  %v427_v62 = vsel %vm208_vm1, nan, %v426_v59  ;;  %vm313_vm1 = vcmp.lt.s32.totalorder %v312_v42, 2  ;;  %v113_v22 = vsel %vm111_vm12, %v112_v20, %v110_v6 }
  0x83   :  { %v322_v63 = vmul.f32 %v218_v60, %v106_v54  ;;  %v532_v0 = vmul.f32 %v427_v62, %v106_v54 }
  0x85   :  { %v538_v4 = vmul.f32 0.02, %v322_v63  ;;  %v546_v45 = vmul.f32 0.02, %v532_v0 }
  0x87   :  { %v540_v9 = vadd.f32 1.0, %v538_v4  ;;  %v548_v2 = vadd.f32 1.0, %v546_v45 }
  0x88   :  { %v618_v17 = vpop.eup %617 }
  0x89   :  { %v542_v13 = vmul.f32 %v540_v9, %v534_v5  ;;  %v550_v14 = vmul.f32 %v548_v2, %v536_v7  ;;  %v620_v3 = vpop.eup %619  ;;  %v318_v8 = vxor.u32 2147483648, %v618_v17 }
  0x8a   :  { %v315_v10 = vxor.u32 2147483648, %v620_v3 }
  0x8b   :  { %544 = vst [vmem:[#allocation7] sm:$0xff] %v542_v13  ;;  %552 = vst [vmem:[#allocation7 + $0x10] sm:$0xff] %v550_v14  ;;  %v319_v19 = vsel %vm317_vm13, %v318_v8, %v620_v3  ;;  %v529_v21 = vsel %vm527_vm14, %v318_v8, %v620_v3 }
  0x8c   :  { %v316_v23 = vsel %vm314_vm15, %v618_v17, %v315_v10  ;;  %v526_v53 = vsel %vm524_vm0, %v618_v17, %v315_v10 }
  0x8d   :  { %v320_v24 = vsel %vm313_vm1, %v316_v23, %v319_v19  ;;  %v530_v25 = vsel %vm523_vm2, %v526_v53, %v529_v21 }
  0x8e   :  { %v321_v26 = vsel %vm311_vm3, nan, %v320_v24  ;;  %v531_v28 = vsel %vm311_vm3, nan, %v530_v25 }
  0x8f   :  { %v323_v27 = vmul.f32 %v321_v26, %v113_v22  ;;  %v533_v18 = vmul.f32 %v531_v28, %v113_v22 }
  0x91   :  { %v539_v29 = vmul.f32 0.02, %v323_v27  ;;  %v547_v1 = vmul.f32 0.02, %v533_v18 }
  0x93   :  { %v541_v32 = vadd.f32 1.0, %v539_v29  ;;  %v549_v33 = vadd.f32 1.0, %v547_v1 }
  0x95   :  { %v543_v47 = vmul.f32 %v541_v32, %v535_v30  ;;  %v551_v34 = vmul.f32 %v549_v33, %v537_v31 }
  0x97   :  { %545 = vst [vmem:[#allocation7 + $0x8] sm:$0xff] %v543_v47  ;;  %553 = vst [vmem:[#allocation7 + $0x18] sm:$0xff] %v551_v34 }
  0x98   :  { %652 = shalt.err (!%p649_p9)
}
  0x99   :  { %565 = dma.vmem_to_hbm [thread:$0]  %s560_s1, 512, %s820_s2, [#allocation6], %s666_s12, %s666_s12, %s667_s13  }
  0x9a   :  { %663 = dma.done.wait [#allocation6], 512  }
  0x9b   :  { %664 = vsyncadd [#allocation6], 4294966784 }
  0x9c   :  { %569 = vsyncpa [#allocation5], 1 }
  0x9d   :  { %570 = vsyncpa [#allocation6], 1 }

</bundles_post_ra>
